<compile_context>
chip_gen: v6e
topology: v6e:2x2x1
jax: 0.10.0
libtpu: 0.0.40
codegen_flags: <defaults>
</compile_context>

<pallas_src>
import functools

import jax
import jax.numpy as jnp
from jax.experimental import pallas as pl
from jax.experimental.pallas import tpu as pltpu


# ----------------------- Pallas kernel -----------------------

def fused_attention_kernel(x_ref, w_ref, b_ref, o_ref, *, n_heads, causal,
                           mxu_dtype):
    """One grid step == one batch element; all intermediates stay on-chip.

    x_ref: [N, E] (mxu_dtype)   w_ref: [E, 3E] (mxu_dtype)
    b_ref: [1, 3E] (f32)        o_ref: [N, E]  (output dtype)
    """
    N, E = x_ref.shape
    H = n_heads
    D = E // H
    scale = 1.0 / (D ** 0.5)

    # ---- QKV projection: MXU matmul with f32 accumulation, f32 bias add ----
    qkv = jax.lax.dot_general(
        x_ref[...], w_ref[...],
        dimension_numbers=(((1,), (0,)), ((), ())),
        preferred_element_type=jnp.float32,
    ) + b_ref[...]                                        # [N, 3E] f32

    # Last-axis layout is (qkv, head, d): q | k | v are contiguous E-wide slabs.
    q_all = qkv[:, 0 * E:1 * E]
    k_all = qkv[:, 1 * E:2 * E]
    v_all = qkv[:, 2 * E:3 * E]

    if causal:
        # Hoisted out of the head loop (iota/compare built once).
        row = jax.lax.broadcasted_iota(jnp.int32, (N, N), 0)
        col = jax.lax.broadcasted_iota(jnp.int32, (N, N), 1)
        causal_mask = col > row

    head_outs = []
    for h in range(H):            # static unroll; per-head slices are lane slices
        lo, hi = h * D, (h + 1) * D
        # Fold 1/sqrt(D) into q (N*D mults instead of N*N on the score matrix).
        qh = (q_all[:, lo:hi] * scale).astype(mxu_dtype)
        kh = k_all[:, lo:hi].astype(mxu_dtype)
        vh = v_all[:, lo:hi].astype(mxu_dtype)

        # Scores: contract the last dims directly (no .T / relayout of K).
        s = jax.lax.dot_general(
            qh, kh, dimension_numbers=(((1,), (1,)), ((), ())),
            preferred_element_type=jnp.float32)           # [N, N] f32
        if causal:
            s = jnp.where(causal_mask, -1e30, s)          # finite mask: no NaN risk

        # Softmax kept in f32; defer the 1/l normalization to after PV.
        m = jnp.max(s, axis=-1, keepdims=True)
        p = jnp.exp(s - m)
        l = jnp.sum(p, axis=-1, keepdims=True)            # [N, 1]
        o = jax.lax.dot_general(
            p.astype(mxu_dtype), vh,
            dimension_numbers=(((1,), (0,)), ((), ())),
            preferred_element_type=jnp.float32)           # [N, D] f32
        # EUP reciprocal (free slot) applied to N*D values, not N*N.
        head_outs.append(o * pl.reciprocal(l, approx=True))

    # Merge heads -> one lane-dense [N, E] store ('b h n d -> b n (h d)').
    out = head_outs[0] if H == 1 else jnp.concatenate(head_outs, axis=-1)
    o_ref[...] = out.astype(o_ref.dtype)


# ----------------------- wrapper -----------------------

def attention_forward(x, w_qkv, b_qkv, *, n_heads, causal,
                      mxu_dtype=jnp.bfloat16):
    """Pallas implementation of Attention.forward.  x: [B, N, E] -> [B, N, E].

    mxu_dtype controls the matmul-operand dtype (bf16 = native MXU fast path on
    v5e/v6e/v7x); bias add, softmax and accumulation always stay in f32.
    Pass mxu_dtype=jnp.float32 for exact f32 semantics.
    """
    B, N, E = x.shape
    E3 = 3 * E
    assert E % n_heads == 0

    # Cast the MXU operands once in the wrapper (halves x/W HBM traffic on the
    # bf16 path).  Bias stays f32.
    x_in = x.astype(mxu_dtype)
    w_in = w_qkv.astype(mxu_dtype)
    b_in = b_qkv.reshape(1, E3).astype(jnp.float32)

    kern = functools.partial(fused_attention_kernel, n_heads=n_heads,
                             causal=causal, mxu_dtype=mxu_dtype)

    # Grid over batch only: a >=2-way "parallel" axis keeps both v7x
    # TensorCores busy; W/bias block indices are constant across the grid so
    # they stay VMEM-resident (no re-DMA per step).
    # NOTE: at block_size-scale shapes everything fits in VMEM; for large N/E
    # this should be tiled (online-softmax over KV tiles + tiled QKV matmul)
    # to stay within the 64 MiB v7x VMEM budget.
    return pl.pallas_call(
        kern,
        out_shape=jax.ShapeDtypeStruct((B, N, E), x.dtype),
        grid=(B,),
        in_specs=[
            pl.BlockSpec((None, N, E), lambda b: (b, 0, 0)),   # x (per batch)
            pl.BlockSpec((E, E3), lambda b: (0, 0)),           # W (resident)
            pl.BlockSpec((1, E3), lambda b: (0, 0)),           # bias (resident)
        ],
        out_specs=pl.BlockSpec((None, N, E), lambda b: (b, 0, 0)),
        compiler_params=pltpu.CompilerParams(
            dimension_semantics=("parallel",)),
    )(x_in, w_in, b_in)
    # TODO(synk): dropout_p > 0 is not implemented (would need in-kernel
    # pltpu.prng_*); the module's default/eval path uses dropout=0.0.


# ----------------------- reference (pure JAX) -----------------------

def attention_reference(x, w_qkv, b_qkv, *, n_heads, causal, matmul_dtype=None):
    """f32 reference; matmul_dtype=bfloat16 mirrors the kernel's MXU casts."""
    B, N, E = x.shape
    H = n_heads
    D = E // H
    md = x.dtype if matmul_dtype is None else matmul_dtype

    qkv = jnp.einsum("bne,ef->bnf", x.astype(md), w_qkv.astype(md),
                     preferred_element_type=jnp.float32)
    qkv = qkv + b_qkv.astype(jnp.float32)
    qkv = qkv.reshape(B, N, 3, H, D)
    qkv = jnp.transpose(qkv, (2, 0, 3, 1, 4))            # [3, B, H, N, D]
    q, k, v = qkv[0], qkv[1], qkv[2]

    s = jnp.einsum("bhnd,bhmd->bhnm", q.astype(md), k.astype(md),
                   preferred_element_type=jnp.float32) / (D ** 0.5)
    if causal:
        row = jax.lax.broadcasted_iota(jnp.int32, (N, N), 0)
        col = jax.lax.broadcasted_iota(jnp.int32, (N, N), 1)
        s = jnp.where(col > row, -jnp.inf, s)
    p = jax.nn.softmax(s, axis=-1)
    o = jnp.einsum("bhnm,bhmd->bhnd", p.astype(md), v.astype(md),
                   preferred_element_type=jnp.float32)
    return jnp.transpose(o, (0, 2, 1, 3)).reshape(B, N, E).astype(x.dtype)


# ----------------------- main -----------------------

if __name__ == "__main__":
    # TransformerConfig(n_heads=2, n_embd=32, block_size=8, causal=True)
    B, N, E, H = 2, 8, 32, 2
    causal = True

    key = jax.random.PRNGKey(0)
    kx, kw, kb = jax.random.split(key, 3)
    x = jax.random.normal(kx, (B, N, E), dtype=jnp.float32)
    # deterministic "Linear(n_embd, 3*n_embd)" params (synthetic init)
    w_qkv = jax.random.normal(kw, (E, 3 * E), dtype=jnp.float32) * (1.0 / (E ** 0.5))
    b_qkv = jax.random.normal(kb, (3 * E,), dtype=jnp.float32) * 0.01

    # 1) exact-precision run (matches the PyTorch f32 forward semantics)
    out_f32 = jax.block_until_ready(
        attention_forward(x, w_qkv, b_qkv, n_heads=H, causal=causal,
                          mxu_dtype=jnp.float32))
    ref_f32 = attention_reference(x, w_qkv, b_qkv, n_heads=H, causal=causal)
    assert out_f32.shape == (B, N, E)
    assert jnp.allclose(out_f32, ref_f32, atol=5e-3, rtol=5e-3), "f32 mismatch"

    # 2) bf16-MXU run (recommended perf path on v5e/v6e/v7x), checked against a
    #    numerically matched bf16-matmul reference.
    out_bf16 = jax.block_until_ready(
        attention_forward(x, w_qkv, b_qkv, n_heads=H, causal=causal,
                          mxu_dtype=jnp.bfloat16))
    ref_bf16 = attention_reference(x, w_qkv, b_qkv, n_heads=H, causal=causal,
                                   matmul_dtype=jnp.bfloat16)
    assert jnp.allclose(out_bf16, ref_bf16, atol=2e-2, rtol=2e-2), "bf16 mismatch"

    print("KERNEL_OK")
</pallas_src>

<mosaic_0001>
module attributes {stable_mosaic.version = 11 : i64} {
  func.func @fused_attention_kernel(%arg0: i32, %arg1: memref<1x8x32xf32, #tpu.memory_space<vmem>>, %arg2: memref<32x96xf32, #tpu.memory_space<vmem>>, %arg3: memref<1x96xf32, #tpu.memory_space<vmem>>, %arg4: memref<1x8x32xf32, #tpu.memory_space<vmem>>) attributes {dimension_semantics = [#tpu.dimension_semantics<parallel>], iteration_bounds = array<i64: 2>, scalar_prefetch = 0 : i64, scratch_operands = 0 : i64, tpu.core_type = #tpu.core_type<tc>, window_params = [{transform_indices = @transform_0, window_bounds = array<i64: 1, 8, 32>}, {pipeline_mode = #tpu.pipeline_mode<synchronous>, transform_indices = @transform_1, window_bounds = array<i64: 32, 96>}, {pipeline_mode = #tpu.pipeline_mode<synchronous>, transform_indices = @transform_2, window_bounds = array<i64: 1, 96>}, {transform_indices = @transform_3, window_bounds = array<i64: 1, 8, 32>}]} {
    %c0 = arith.constant 0 : index
    %c0_0 = arith.constant 0 : index
    %c0_1 = arith.constant 0 : index
    %0 = vector.load %arg1[%c0, %c0_0, %c0_1] : memref<1x8x32xf32, #tpu.memory_space<vmem>>, vector<1x8x32xf32>
    %1 = vector.shape_cast %0 : vector<1x8x32xf32> to vector<8x32xf32>
    %c0_2 = arith.constant 0 : index
    %c0_3 = arith.constant 0 : index
    %2 = vector.load %arg2[%c0_2, %c0_3] : memref<32x96xf32, #tpu.memory_space<vmem>>, vector<32x96xf32>
    %cst = arith.constant dense<0.000000e+00> : vector<8x96xf32>
    %3 = tpu.matmul %1, %2, %cst {dimension_numbers = #tpu.dot_dimension_numbers<[1], [0], [0], [1], [0, 0, 1, 1], [], []>} : vector<8x32xf32>, vector<32x96xf32>, vector<8x96xf32> -> vector<8x96xf32>
    %c0_4 = arith.constant 0 : index
    %c0_5 = arith.constant 0 : index
    %4 = vector.load %arg3[%c0_4, %c0_5] : memref<1x96xf32, #tpu.memory_space<vmem>>, vector<1x96xf32>
    %5 = vector.broadcast %4 : vector<1x96xf32> to vector<8x96xf32>
    %6 = arith.addf %3, %5 : vector<8x96xf32>
    %7 = vector.extract_strided_slice %6 {offsets = [0, 0], sizes = [8, 32], strides = [1, 1]} : vector<8x96xf32> to vector<8x32xf32>
    %8 = vector.extract_strided_slice %6 {offsets = [0, 32], sizes = [8, 32], strides = [1, 1]} : vector<8x96xf32> to vector<8x32xf32>
    %9 = vector.extract_strided_slice %6 {offsets = [0, 64], sizes = [8, 32], strides = [1, 1]} : vector<8x96xf32> to vector<8x32xf32>
    %10 = tpu.iota {dimensions = array<i32: 0>} : vector<8x8xi32>
    %11 = tpu.iota {dimensions = array<i32: 1>} : vector<8x8xi32>
    %12 = arith.cmpi sgt, %11, %10 : vector<8x8xi32>
    %13 = vector.extract_strided_slice %7 {offsets = [0, 0], sizes = [8, 16], strides = [1, 1]} : vector<8x32xf32> to vector<8x16xf32>
    %cst_6 = arith.constant 2.500000e-01 : f32
    %14 = vector.broadcast %cst_6 : f32 to vector<8x16xf32>
    %15 = arith.mulf %13, %14 : vector<8x16xf32>
    %16 = vector.extract_strided_slice %8 {offsets = [0, 0], sizes = [8, 16], strides = [1, 1]} : vector<8x32xf32> to vector<8x16xf32>
    %17 = vector.extract_strided_slice %9 {offsets = [0, 0], sizes = [8, 16], strides = [1, 1]} : vector<8x32xf32> to vector<8x16xf32>
    %cst_7 = arith.constant dense<0.000000e+00> : vector<8x8xf32>
    %18 = tpu.matmul %15, %16, %cst_7 {dimension_numbers = #tpu.dot_dimension_numbers<[1], [1], [0], [0], [0, 0, 1, 0], [], []>} : vector<8x16xf32>, vector<8x16xf32>, vector<8x8xf32> -> vector<8x8xf32>
    %cst_8 = arith.constant -1.000000e+30 : f32
    %19 = vector.broadcast %cst_8 : f32 to vector<8x8xf32>
    %20 = arith.select %12, %19, %18 : vector<8x8xi1>, vector<8x8xf32>
    %cst_9 = arith.constant dense<0xFF800000> : vector<8xf32>
    %21 = vector.multi_reduction <maximumf>, %20, %cst_9 [1] : vector<8x8xf32> to vector<8xf32>
    %22 = vector.shape_cast %21 : vector<8xf32> to vector<8x1xf32>
    %23 = vector.broadcast %22 : vector<8x1xf32> to vector<8x8xf32>
    %24 = arith.subf %20, %23 : vector<8x8xf32>
    %25 = math.exp %24 : vector<8x8xf32>
    %cst_10 = arith.constant dense<0.000000e+00> : vector<8xf32>
    %26 = vector.multi_reduction <add>, %25, %cst_10 [1] : vector<8x8xf32> to vector<8xf32>
    %27 = vector.shape_cast %26 : vector<8xf32> to vector<8x1xf32>
    %cst_11 = arith.constant dense<0.000000e+00> : vector<8x16xf32>
    %28 = tpu.matmul %25, %17, %cst_11 {dimension_numbers = #tpu.dot_dimension_numbers<[1], [0], [0], [1], [0, 0, 1, 1], [], []>} : vector<8x8xf32>, vector<8x16xf32>, vector<8x16xf32> -> vector<8x16xf32>
    %29 = tpu.reciprocal %27 {approx = true} : vector<8x1xf32> -> vector<8x1xf32>
    %30 = vector.broadcast %29 : vector<8x1xf32> to vector<8x16xf32>
    %31 = arith.mulf %28, %30 : vector<8x16xf32>
    %32 = vector.extract_strided_slice %7 {offsets = [0, 16], sizes = [8, 16], strides = [1, 1]} : vector<8x32xf32> to vector<8x16xf32>
    %cst_12 = arith.constant 2.500000e-01 : f32
    %33 = vector.broadcast %cst_12 : f32 to vector<8x16xf32>
    %34 = arith.mulf %32, %33 : vector<8x16xf32>
    %35 = vector.extract_strided_slice %8 {offsets = [0, 16], sizes = [8, 16], strides = [1, 1]} : vector<8x32xf32> to vector<8x16xf32>
    %36 = vector.extract_strided_slice %9 {offsets = [0, 16], sizes = [8, 16], strides = [1, 1]} : vector<8x32xf32> to vector<8x16xf32>
    %cst_13 = arith.constant dense<0.000000e+00> : vector<8x8xf32>
    %37 = tpu.matmul %34, %35, %cst_13 {dimension_numbers = #tpu.dot_dimension_numbers<[1], [1], [0], [0], [0, 0, 1, 0], [], []>} : vector<8x16xf32>, vector<8x16xf32>, vector<8x8xf32> -> vector<8x8xf32>
    %cst_14 = arith.constant -1.000000e+30 : f32
    %38 = vector.broadcast %cst_14 : f32 to vector<8x8xf32>
    %39 = arith.select %12, %38, %37 : vector<8x8xi1>, vector<8x8xf32>
    %cst_15 = arith.constant dense<0xFF800000> : vector<8xf32>
    %40 = vector.multi_reduction <maximumf>, %39, %cst_15 [1] : vector<8x8xf32> to vector<8xf32>
    %41 = vector.shape_cast %40 : vector<8xf32> to vector<8x1xf32>
    %42 = vector.broadcast %41 : vector<8x1xf32> to vector<8x8xf32>
    %43 = arith.subf %39, %42 : vector<8x8xf32>
    %44 = math.exp %43 : vector<8x8xf32>
    %cst_16 = arith.constant dense<0.000000e+00> : vector<8xf32>
    %45 = vector.multi_reduction <add>, %44, %cst_16 [1] : vector<8x8xf32> to vector<8xf32>
    %46 = vector.shape_cast %45 : vector<8xf32> to vector<8x1xf32>
    %cst_17 = arith.constant dense<0.000000e+00> : vector<8x16xf32>
    %47 = tpu.matmul %44, %36, %cst_17 {dimension_numbers = #tpu.dot_dimension_numbers<[1], [0], [0], [1], [0, 0, 1, 1], [], []>} : vector<8x8xf32>, vector<8x16xf32>, vector<8x16xf32> -> vector<8x16xf32>
    %48 = tpu.reciprocal %46 {approx = true} : vector<8x1xf32> -> vector<8x1xf32>
    %49 = vector.broadcast %48 : vector<8x1xf32> to vector<8x16xf32>
    %50 = arith.mulf %47, %49 : vector<8x16xf32>
    %51 = tpu.concatenate %31, %50 in 1 : vector<8x16xf32>, vector<8x16xf32> -> vector<8x32xf32>
    %c0_18 = arith.constant 0 : index
    %c0_19 = arith.constant 0 : index
    %c0_20 = arith.constant 0 : index
    %52 = vector.load %arg4[%c0_18, %c0_19, %c0_20] : memref<1x8x32xf32, #tpu.memory_space<vmem>>, vector<1x8x32xf32>
    %53 = vector.shape_cast %52 : vector<1x8x32xf32> to vector<8x32xf32>
    %54 = vector.shape_cast %51 : vector<8x32xf32> to vector<1x8x32xf32>
    tpu.vector_store %arg4[%c0_18, %c0_19, %c0_20], %54 {strides = array<i32>} : memref<1x8x32xf32, #tpu.memory_space<vmem>>, vector<1x8x32xf32>,
    return
  }
  func.func @transform_0(%arg0: i32) -> (i32, i32, i32) {
    %c0_i32 = arith.constant 0 : i32
    %c0_i32_0 = arith.constant 0 : i32
    %c0_i32_1 = arith.constant 0 : i32
    return %arg0, %c0_i32, %c0_i32_0 : i32, i32, i32
  }
  func.func @transform_1(%arg0: i32) -> (i32, i32) {
    %c0_i32 = arith.constant 0 : i32
    %c0_i32_0 = arith.constant 0 : i32
    %c0_i32_1 = arith.constant 0 : i32
    return %c0_i32, %c0_i32_0 : i32, i32
  }
  func.func @transform_2(%arg0: i32) -> (i32, i32) {
    %c0_i32 = arith.constant 0 : i32
    %c0_i32_0 = arith.constant 0 : i32
    %c0_i32_1 = arith.constant 0 : i32
    return %c0_i32, %c0_i32_0 : i32, i32
  }
  func.func @transform_3(%arg0: i32) -> (i32, i32, i32) {
    %c0_i32 = arith.constant 0 : i32
    %c0_i32_0 = arith.constant 0 : i32
    %c0_i32_1 = arith.constant 0 : i32
    return %arg0, %c0_i32, %c0_i32_0 : i32, i32, i32
  }
}

</mosaic_0001>

<bundles_post_ra>
// kernel: tpu_custom_call.1
= control target key start
LH: loop header
LB: loop body
LE: loop exit
PB: predicated region body
PF: predicated region fallthrough
CT: control target
= control target key end

     0   :  { %8 = vsyncpa [#allocation3], 0  ;;  %s1223_s0 = inlined_call_operand.hbm [shape: f32[2,8,32], index: 0, kind: input, shape index: {}]   ;;  %s1224_s1 = inlined_call_operand.hbm [shape: f32[32,96], index: 1, kind: input, shape index: {}]   ;;  %s1225_s2 = inlined_call_operand.vmem [shape: f32[1,96], index: 2, kind: input, shape index: {}]   ;;  %s1226_s3 = inlined_call_operand.hbm [shape: f32[2,8,32], index: 3, kind: output, shape index: {}]  }
   0x1   :  { %10 = vsyncpa [#allocation3 + $0x1], 0 }
   0x2   :  { %11 = vsyncpa [#allocation6], 0 }
   0x3   :  { %12 = vsyncpa [#allocation4], 0 }
   0x4   :  { %14 = vsyncpa [#allocation4 + $0x1], 0  ;;  %s1025_s12 = smov 0   ;;  %s1027_s13 = smov 0  }
   0x5   :  { %s1029_s14 = smov 0   ;;  %s1031_s15 = smov 0  }
   0x6 LB: > { %s1046_s16 = sadd.s32 4294967295, %s990_s15   ;;  %s727_s17 = sadd.s32 4294967294, %s990_s15   ;;  %s990_s15 = sphi %s1031_s15, %s1248_s15   ;;  %s986_s14 = sphi %s1029_s14, %s1247_s14   ;;  %s982_s13 = sphi %s1027_s13, %s1246_s13   ;;  %s978_s12 = sphi %s1025_s12, %s1245_s12  }
   0x7   : > { %p40_p0 = scmp.ne.s32.totalorder %s982_s13, %s978_s12  ;;  %p1227_p1 = scmp.eq.s32.totalorder %s1046_s16, 0 }
   0x8   : > { %p112_p3 = scmp.eq.s32.totalorder %s727_s17, 1  ;;  %p728_p5 = scmp.ge.s32.totalorder %s990_s15, 1 }
   0x9   : > { %p1055_p4 = por %p1227_p1, %p40_p0  ;;  %p119_p7 = scmp.lt.s32.totalorder %s990_s15, 3 }
   0xa   : > { %p1060_p6 = por %p112_p3, %p40_p0  ;;  %s992_s21 = smov [#allocation5]  }
   0xb   : > { %s1231_s18 = scalar_select %p1055_p4, 1, 0 }
   0xc   : > { %s1232_s19 = scalar_select %p1060_p6, 1, 0 }
   0xd   : > { %p1065_p8 = pnand %p728_p5, %p119_p7  ;;  %s131_s22 = sshll.u32 %s992_s21, 4  ;;  %s132_s22 = int_to_ptr.vmem [resolvable:$true] %s131_s22 }
   0xe   : > { %s1079_s24 = sadd.s32 1, %s990_s15   ;;  %s27_s25 = sadd.s32 1, %s986_s14 }
   0xf   : > { %s1233_s20 = scalar_select %p1065_p8, 1, 0 }
  0x10   : > { %p801_p9 = pneg %p1065_p8  ;;  %s24_s26 = ssub.s32 %s990_s15, %s1079_s24 }
  0x11   : > { %s879_s27 = scalar_lea.vmem %s132_s22, 512  ;;  %p887_p5 = scmp.lt.s32.totalorder %s132_s22, %s132_s22 }
  0x12   : > { %p1074_p11 = pnand %p801_p9, %p1227_p1  ;;  %p880_p13 = scmp.ne.s32.totalorder %s132_s22, %s879_s27 }
  0x13   : > { %p888_p7 = scmp.lt.s32.totalorder %s879_s27, %s879_s27 }
  0x14   : > { %p870_p12 = pneg %p1074_p11 }
  0x15   : > { %p889_p10 = por %p888_p7, %p887_p5 }
  0x16   : > { %p882_p0 = pnand %p880_p13, %p870_p12 }
  0x18   : > { %p883_p3 = pneg %p882_p0 }
  0x1a   : > { %p890_p2 = pnand %p889_p10, %p883_p3 }
  0x1c   : > { %893 = shalt.err (!%p890_p2)
}
  0x1d   : > { %s993_s28 = smov 128   ;;  %s994_s29 = smov 8  }
  0x1e   : > { %804 = dma.hbm_to_vmem [thread:$0]  (!%p1074_p11), %s1224_s1, 512, %s132_s22, [#allocation6], %s993_s28, %s993_s28, %s994_s29  }
  0x1f   : > { %p25_p9 = scmp.eq.s32.totalorder %s24_s26, 0  ;;  %p34_p12 = scmp.ne.s32.totalorder %s986_s14, %s982_s13 }
  0x20   : > { %p35_p10 = scmp.eq.s32.totalorder %s990_s15, 0  ;;  %p814_p2 = scmp.lt.s32.totalorder %s990_s15, 2 }
  0x21   : > { %s1096_s5 = scalar_select %p25_p9, %s986_s14, %s27_s25  }
  0x22   : > { %p36_p13 = por %p35_p10, %p34_p12  ;;  %p1235_p0 = scmp.eq.s32.totalorder %s1046_s16, 1 }
  0x23   : > { %s148_s7 = sand.u32 1, %s986_s14   ;;  %s732_s8 = sshll.u32 %s990_s15, 7 }
  0x24   : > { %p1100_p3 = por %p1235_p0, %p34_p12  ;;  %s731_s9 = sshll.u32 %s148_s7, 3 }
  0x25   : > { %s1109_s17 = scalar_lea.hbm %s1223_s0, %s732_s8  ;;  %s152_s21 = scalar_lea.vmem [#allocation2], %s731_s9 }
  0x26   : > { %s1236_s6 = scalar_select %p1100_p3, 1, 0 }
  0x27   : > { %s159_s22 = sshll.u32 %s152_s21, 4  ;;  %p1111_p11 = pnand %p814_p2, %p36_p13  ;;  %s160_s22 = int_to_ptr.vmem [resolvable:$true] %s159_s22 }
  0x28   : > { %s149_s25 = scalar_lea.sflag [#allocation3], %s148_s7  ;;  %s894_s26 = scalar_lea.hbm %s1109_s17, 128 }
  0x29   : > { %p895_p5 = scmp.ne.s32.totalorder %s1109_s17, %s894_s26  ;;  %p896_p7 = pneg %p1111_p11 }
  0x2a   : > { %s899_s29 = scalar_lea.hbm %s1223_s0, 256  ;;  %p900_p10 = scmp.lt.s32.totalorder %s1109_s17, %s1223_s0 }
  0x2b   : > { %p897_p9 = pnand %p896_p7, %p895_p5  ;;  %p901_p2 = scmp.lt.s32.totalorder %s899_s29, %s894_s26 }
  0x2d   : > { %p898_p12 = pneg %p897_p9  ;;  %p902_p13 = por %p901_p2, %p900_p10 }
  0x2f   : > { %p903_p0 = pnand %p902_p13, %p898_p12 }
  0x31   : > { %906 = shalt.err (!%p903_p0)
}
  0x32   : > { %s907_s8 = scalar_lea.vmem %s160_s22, 128  ;;  %s995_s7 = smov [#allocation2]  }
  0x33   : > { %p908_p1 = scmp.ne.s32.totalorder %s160_s22, %s907_s8  ;;  %s912_s9 = sshll.u32 %s995_s7, 4  ;;  %s913_s9 = int_to_ptr.vmem [resolvable:$false] %s912_s9 }
  0x34   : > { %s914_s10 = scalar_lea.vmem %s913_s9, 256  ;;  %p915_p5 = scmp.lt.s32.totalorder %s160_s22, %s913_s9 }
  0x35   : > { %p910_p6 = pnand %p908_p1, %p896_p7  ;;  %p916_p9 = scmp.lt.s32.totalorder %s914_s10, %s907_s8 }
  0x37   : > { %p911_p3 = pneg %p910_p6  ;;  %p917_p4 = por %p916_p9, %p915_p5 }
  0x39   : > { %p918_p8 = pnand %p917_p4, %p911_p3 }
  0x3b   : > { %921 = shalt.err (!%p918_p8)
}
  0x3c   : > { %808 = dma.hbm_to_vmem [thread:$0]  (!%p1111_p11), %s1109_s17, 128, %s160_s22, %s149_s25  }
  0x3d   : > { %p1238_p12 = scmp.ne.s32.totalorder %s1233_s20, 0 }
  0x3e   : > { %s1132_s11 = sand.u32 (!%p1238_p12), 1, %s982_s13   ;;  %p1239_p1 = scmp.ne.s32.totalorder (!%p1238_p12), %s1231_s18, 0 }
  0x3f   : > { %168 = sbr.rel (%p1238_p12) target bundleno = 1074 (0x432), region = 32  ;;  %s734_s21 = sshll.u32 (!%p1238_p12), %s1132_s11, 3 }
  0x40   : > { %s171_s26 = scalar_lea.sflag (!%p1238_p12), [#allocation3], %s1132_s11  ;;  %s174_s27 = scalar_lea.vmem (!%p1238_p12), [#allocation2], %s734_s21 }
  0x44   : > { %965 = dma.done.wait (%p1239_p1), %s171_s26, 128  }
  0x45   : > { %967 = vsyncadd (%p1239_p1), %s171_s26, 4294967168  ;;  %p1240_p4 = scmp.eq.s32.totalorder %s1046_s16, 0 }
  0x47   : > { %969 = dma.done.wait (%p1240_p4), [#allocation6], 512   ;;  %p1241_p6 = pmov %p1240_p4 }
  0x48   : > { %v996_v0 = vmov 0.0   ;;  %vm997_vm0 = vmmov 0   ;;  %v205_v1 = vld [vmem:[#allocation5 + $0x18] sm:$0xff]  ;;  %v204_v2 = vld [vmem:[#allocation5 + $0x10] sm:$0xff]  ;;  %v203_v3 = vld [vmem:[#allocation5 + $0x8] sm:$0xff]  ;;  %vm213_vm1 = vcmask 261120   ;;  %v287_v14 = vlaneseq }
  0x49   : > { %971 = vsyncadd (%p1241_p6), [#allocation6], 4294966784  ;;  %762 = vmatprep.subr.mxu0 %v996_v0  ;;  %770 = vmatprep.mubr.msk.f32.mxu0 %vm997_vm0, %v996_v0  ;;  %v202_v4 = vld [vmem:[#allocation5] sm:$0xff]  ;;  %v201_v5 = vld [vmem:[%s174_s27] sm:$0xff]  ;;  %s998_s17 = smov 96   ;;  %s999_s22 = smov 112  }
  0x4a   : > { %773 = vmatprep.subr.mxu1 %v996_v0  ;;  %775 = vmatprep.mubr.msk.f32.mxu1 %vm997_vm0, %v996_v0  ;;  %v737_v6 = vld [vmem:[%s1225_s2] ss:$0 sm:$0xff]  ;;  %s1000_s23 = smov 80   ;;  %vm296_vm2 = vcmask 130048   ;;  %v288_v15 = vshrl.u32 %v287_v14, 7  ;;  %v290_v16 = vand.u32 127, %v287_v14 }
  0x4b   : > { %763 = vmatpush3.msra.mxu0 %v205_v1  ;;  %vm373_vm4 = vcmask 64512   ;;  %s1001_s25 = smov 48   ;;  %s1002_s28 = smov 64  }
  0x4c   : > { %764 = vmatprep.subr.mxu0 %v996_v0  ;;  %vm291_vm3 = vcmp.gt.s32.totalorder %v290_v16, %v288_v15  ;;  %s1003_s29 = smov 16   ;;  %s746_s30 = sshll.u32 %s1046_s16, 7 }
  0x4d   : > { %765 = vmatpush3.msra.mxu0 %v204_v2  ;;  %s200_s4 = scalar_lea.vmem [#allocation7], %s734_s21  ;;  %s1184_s10 = scalar_lea.hbm %s1226_s3, %s746_s30 }
  0x4e   : > { %766 = vmatprep.subr.mxu0 %v996_v0  ;;  %s647_s8 = sshll.u32 %s200_s4, 4  ;;  %s634_s26 = scalar_lea.sflag [#allocation4], %s1132_s11  ;;  %s648_s8 = int_to_ptr.vmem [resolvable:$true] %s647_s8 }
  0x4f   : > { %767 = vmatpush3.msra.mxu0 %v203_v3  ;;  %s922_s27 = scalar_lea.vmem %s648_s8, 128  ;;  %p1242_p3 = scmp.ne.s32.totalorder %s1236_s6, 0 }
  0x50   : > { %768 = vmatprep.subr.mxu0 %v996_v0  ;;  %p923_p8 = scmp.ne.s32.totalorder %s648_s8, %s922_s27  ;;  %s1004_s16 = smov [#allocation7]  }
  0x51   : > { %769 = vmatpush3.msra.mxu0 %v202_v4  ;;  %s926_s21 = sshll.u32 %s1004_s16, 4  ;;  %s927_s21 = int_to_ptr.vmem [resolvable:$false] %s926_s21 }
  0x52   : > { %771 = vmatmul.mubr.msk.f32.vlgmr.msra.gmra.mxu0 %vm213_vm1, %v201_v5  ;;  %783 = vmatprep.subr.mxu0 %v996_v0  ;;  %p924_p11 = pnand %p923_p8, %p1242_p3  ;;  %s928_s18 = scalar_lea.vmem %s927_s21, 256 }
  0x53   : > { %785 = vmatprep.mubr.msk.f32.mxu0 %vm997_vm0, %v996_v0  ;;  %p929_p10 = scmp.lt.s32.totalorder %s648_s8, %s927_s21  ;;  %p930_p2 = scmp.lt.s32.totalorder %s928_s18, %s922_s27 }
  0x54   : > { %p925_p7 = pneg %p924_p11 }
  0x55   : > { %p931_p13 = por %p930_p2, %p929_p10 }
  0x57   : > { %p932_p0 = pnand %p931_p13, %p925_p7 }
 0x112   : > { %v283_v7 = vpop.f32.mrf.mxu0 }
 0x113   : > { %v284_v8 = vadd.f32 %v737_v6, %v283_v7 }
 0x114   : > { %v772_v9 = vpop.f32.mrf.mxu0 }
 0x115   : > { %294 = vrot.lane.b32.xlu0 %v284_v8, %s998_s17  ;;  %v292_v10 = vmul.f32 0.25, %v284_v8 }
 0x117   : > { %461 = vrot.lane.b32.xlu1 %v292_v10, %s999_s22 }
 0x119   : > { %463 = vrot.lane.b32.xlu0 %v284_v8, %s1000_s23 }
 0x187   : > { %v295_v11 = vpop.permute.xlu0 %294 }
 0x188   : > { %774 = vmatpush3.xpose.msk.msra.mxu1 %vm296_vm2, %v295_v11 }
 0x189   : > { %778 = vmatprep.subr.mxu1 %v996_v0  ;;  %v462_v13 = vpop.permute.xlu1 %461 }
 0x18b   : > { %v464_v12 = vpop.permute.xlu0 %463  ;;  %776 = vmatmul.mubr.msk.f32.vlgmr.msra.gmra.mxu1 %vm296_vm2, %v292_v10 }
 0x18c   : > { %784 = vmatpush3.xpose.msk.msra.mxu0 %vm296_vm2, %v464_v12  ;;  %780 = vmatprep.mubr.msk.f32.mxu1 %vm997_vm0, %v996_v0 }
 0x18f   : > { %786 = vmatmul.mubr.msk.f32.vlgmr.msra.gmra.mxu0 %vm296_vm2, %v462_v13 }
 0x24b   : > { %v368_v17 = vpop.f32.mrf.mxu1 }
 0x24c   : > { %v372_v18 = vsel %vm291_vm3, -1e+30, %v368_v17 }
 0x24d   : > { %v777_v19 = vpop.f32.mrf.mxu1  ;;  %v374_v20 = vsel %vm373_vm4, %v372_v18, -inf }
 0x24e   : > { %375 = vmax.xlane.f32.xlu1 %v374_v20 }
 0x24f   : > { %v535_v21 = vpop.f32.mrf.mxu0 }
 0x250   : > { %v539_v22 = vsel %vm291_vm3, -1e+30, %v535_v21 }
 0x251   : > { %v787_v23 = vpop.f32.mrf.mxu0  ;;  %v540_v24 = vsel %vm373_vm4, %v539_v22, -inf }
 0x252   : > { %541 = vmax.xlane.f32.xlu0 %v540_v24 }
 0x25f   : > { %549 = vrot.lane.b32.xlu1 %v284_v8, %s1001_s25 }
 0x268   : > { %383 = vrot.lane.b32.xlu0 %v284_v8, %s1002_s28 }
 0x2d7   : > { %v376_v25 = vpop.xlane.xlu1 %375 }
 0x2d8   : > { %v377_v26 = vsub.f32 %v372_v18, %v376_v25 }
 0x2da   : > { %v378_v27 = vmul.f32 1.442695, %v377_v26 }
 0x2db   : > { %v542_v28 = vpop.xlane.xlu0 %541  ;;  %v550_v33 = vpop.permute.xlu1 %549 }
 0x2dc   : > { %860 = vpow2.f32 %v378_v27  ;;  %v543_v29 = vsub.f32 %v539_v22, %v542_v28 }
 0x2de   : > { %v544_v30 = vmul.f32 1.442695, %v543_v29 }
 0x2df   : > { %v384_v31 = vpop.permute.xlu0 %383 }
 0x2e0   : > { %862 = vpow2.f32 %v544_v30  ;;  %779 = vmatpush3.msra.mxu1 %v384_v31 }
 0x2e1   : > { %788 = vmatprep.subr.mxu1 %v996_v0 }
 0x2e9   : > { %v861_v32 = vpop.eup %860 }
 0x2ea   : > { %781 = vmatmul.mubr.msk.f32.vlgmr.msra.gmra.mxu1 %vm373_vm4, %v861_v32  ;;  %v380_v34 = vsel %vm373_vm4, %v861_v32, 0.0 }
 0x2eb   : > { %789 = vmatpush3.msra.mxu1 %v550_v33  ;;  %381 = vadd.xlane.f32.xlu0 %v380_v34 }
 0x2ec   : > { %790 = vmatprep.mubr.msk.f32.mxu1 %vm997_vm0, %v996_v0 }
 0x2ed   : > { %v863_v35 = vpop.eup %862 }
 0x2ee   : > { %791 = vmatmul.mubr.msk.f32.vlgmr.msra.gmra.mxu1 %vm373_vm4, %v863_v35  ;;  %v546_v36 = vsel %vm373_vm4, %v863_v35, 0.0 }
 0x2ef   : > { %547 = vadd.xlane.f32.xlu1 %v546_v36 }
 0x374   : > { %v382_v44 = vpop.xlane.xlu0 %381 }
 0x378   : > { %v548_v37 = vpop.xlane.xlu1 %547 }
 0x379   : > { %864 = vrcp.f32 %v548_v37 }
 0x37a   : > { %866 = vrcp.f32 %v382_v44 }
 0x386   : > { %v865_v40 = vpop.eup %864 }
 0x387   : > { %v867_v45 = vpop.eup %866 }
 0x3aa   : > { %v455_v38 = vpop.f32.mrf.mxu1 }
 0x3ab   : > { %v460_v46 = vmul.f32 %v867_v45, %v455_v38 }
 0x3ac   : > { %v782_v39 = vpop.f32.mrf.mxu1 }
 0x3ae   : > { %v621_v41 = vpop.f32.mrf.mxu1 }
 0x3af   : > { %v626_v42 = vmul.f32 %v865_v40, %v621_v41 }
 0x3b0   : > { %v792_v43 = vpop.f32.mrf.mxu1 }
 0x3b1   : > { %628 = vrot.lane.b32.xlu0 %v626_v42, %s1003_s29 }
 0x423   : > { %v629_v47 = vpop.permute.xlu0 %628 }
 0x424   : > { %v631_v48 = vsel %vm296_vm2, %v460_v46, %v629_v47 }
 0x425   : > { %632 = vst.msk [vmem:[%s200_s4] sm:$0xff] %vm213_vm1, %v631_v48 }
 0x426   : > { %935 = shalt.err (!%p932_p0)
}
 0x427   : > { %s936_s20 = scalar_lea.hbm %s1184_s10, 128  ;;  %s940_s22 = scalar_lea.hbm %s1226_s3, 256 }
 0x428   : > { %p937_p5 = scmp.ne.s32.totalorder %s1184_s10, %s936_s20  ;;  %p941_p1 = scmp.lt.s32.totalorder %s1184_s10, %s1226_s3 }
 0x429   : > { %p942_p4 = scmp.lt.s32.totalorder %s940_s22, %s936_s20 }
 0x42a   : > { %p938_p9 = pnand %p937_p5, %p1242_p3 }
 0x42b   : > { %p943_p6 = por %p942_p4, %p941_p1 }
 0x42c   : > { %p939_p12 = pneg %p938_p9 }
 0x42e   : > { %p944_p8 = pnand %p943_p6, %p939_p12 }
 0x430   : > { %947 = shalt.err (!%p944_p8)
}
 0x431   : > { %799 = dma.vmem_to_hbm [thread:$0]  (%p1242_p3), %s648_s8, 128, %s1184_s10, %s634_s26  }
 0x432 PF: > { %s659_s28 = sand.u32 1, %s978_s12   ;;  %p1243_p11 = scmp.ne.s32.totalorder %s1232_s19, 0 }
 0x433   : > { %p1244_p7 = scmp.ge.s32.totalorder %s990_s15, 2  ;;  %s660_s29 = scalar_lea.sflag [#allocation4], %s659_s28 }
 0x435   : > { %p810_p10 = pnand %p1244_p7, %p1243_p11 }
 0x437   : > { %p811_p2 = pneg %p810_p10 }
 0x439   : > { %973 = dma.done.wait (%p811_p2), %s660_s29, 128  }
 0x43a   : > { %975 = vsyncadd (%p811_p2), %s660_s29, 4294967168  ;;  %p17_p13 = scmp.ge.s32.totalorder %s1079_s24, 4   ;;  %s1245_s12 = smov %s982_s13 }
 0x43b   : > { %s1246_s13 = smov %s986_s14  ;;  %s1247_s14 = smov %s1096_s5 }
 0x43c   : > { %s1248_s15 = smov %s1079_s24  ;;  %19 = sbr.rel (!%p17_p13) target bundleno = 6 (0x6), region = 81 }
 0x441   :  { %665 = vsyncpa [#allocation3], 1 }
 0x442   :  { %667 = vsyncpa [#allocation3 + $0x1], 1 }
 0x443   :  { %668 = vsyncpa [#allocation6], 1 }
 0x444   :  { %669 = vsyncpa [#allocation4], 1 }
 0x445   :  { %671 = vsyncpa [#allocation4 + $0x1], 1 }

</bundles_post_ra>
